<compile_context>
chip_gen: v7x
topology: tpu7x:2x2x1
jax: 0.10.0
libtpu: 0.0.40
codegen_flags: <defaults>
</compile_context>

<pallas_src>
import functools

import numpy as np
import jax
import jax.numpy as jnp
from jax.experimental import pallas as pl
from jax.experimental.pallas import tpu as pltpu


# ----------------------------- Pallas kernel ------------------------------ #
def se_kernel(x_ref, pool_t_ref, up_t_ref, w1_ref, b1_ref, w2_ref, b2_ref,
              o_ref, *, bd, hw):
    # x_ref / o_ref: (C, Bd*HW) -- lanes = flattened (H, W) per depth slice,
    # sublanes = channels.  Constants are loaded once and reused across the
    # statically unrolled per-depth-slice loop (per-slice temporaries are KiB).
    pool_t = pool_t_ref[...]                  # (HW,   HpWp)
    up_t = up_t_ref[...]                      # (HpWp, HW)
    w1 = w1_ref[...]                          # (Cr, C)   BN1 folded in
    b1 = b1_ref[...]                          # (Cr, 1)
    w2 = w2_ref[...]                          # (C, Cr)   BN2 folded in
    b2 = b2_ref[...]                          # (C, 1)

    for d in range(bd):
        sl = pl.ds(d * hw, hw)                # static, 128-aligned lane window

        # AvgPool3d (1, r, r): right-matmul with the (HW, HpWp) pooling matrix.
        pooled = jnp.dot(x_ref[:, sl], pool_t,
                         preferred_element_type=jnp.float32)        # (C, HpWp)

        # Conv3d 1x1x1 (C -> Cr) with folded BN, then ELU (alpha=1).
        h = jnp.dot(w1, pooled, preferred_element_type=jnp.float32) + b1
        # exp(min(h,0))-1: abs error vs expm1 < 1.2e-7 near 0-; expm1 is kept
        # out of the kernel for maximally portable Mosaic lowering.
        h = jnp.where(h > 0, h, jnp.exp(jnp.minimum(h, 0.0)) - 1.0)

        # Conv3d 1x1x1 (Cr -> C) with folded BN, then Sigmoid.
        q = jnp.dot(w2, h, preferred_element_type=jnp.float32) + b2
        s = jax.nn.sigmoid(q)                                        # (C, HpWp)

        # Trilinear upsample (align_corners=True, depth factor identity).
        y = jnp.dot(s, up_t, preferred_element_type=jnp.float32)     # (C, HW)

        # z = x + y*x.  Re-read the VMEM-resident input slice (keeps nothing
        # live across the matmul chain); lane-dense unmasked store.
        o_ref[:, sl] = (x_ref[:, sl] * (1.0 + y)).astype(o_ref.dtype)


# ------------------------------ glue helpers ------------------------------ #
def _pool_matrix(out_size, in_size):
    r = in_size // out_size
    P = np.zeros((out_size, in_size), dtype=np.float32)
    for i in range(out_size):
        P[i, i * r:(i + 1) * r] = 1.0 / r
    return P


def _upsample_matrix(out_size, in_size):
    # linear interpolation, align_corners=True (matches nn.Upsample)
    U = np.zeros((out_size, in_size), dtype=np.float32)
    if in_size == 1 or out_size == 1:
        U[:, 0] = 1.0
        return U
    for o in range(out_size):
        src = o * (in_size - 1) / (out_size - 1)
        i0 = int(np.floor(src))
        i1 = min(i0 + 1, in_size - 1)
        f = src - i0
        U[o, i0] += 1.0 - f
        U[o, i1] += f
    return U


def _tpu_budgets():
    """Generation-aware (VMEM capacity, TensorCore count) with safe fallbacks."""
    vmem_cap = 128 << 20
    try:
        info = pltpu.get_tpu_info()
        cap = getattr(info, "vmem_capacity_bytes", None)
        if cap:
            vmem_cap = int(cap)
    except Exception:
        pass
    # v7x exposes 64 MiB VMEM per TensorCore and has 2 TCs; v5e/v6e: 128 MiB, 1 TC.
    num_tc = 2 if vmem_cap <= (64 << 20) else 1
    return vmem_cap, num_tc


def _pick_depth_block(N, D, C, HW, vmem_cap, num_tc):
    """Largest depth-block Bd (divisor of D) whose in+out f32 block fits the
    generation-dependent data budget, preferring 128-aligned lane widths and,
    on multi-TensorCore chips, a parallel step count divisible by num_tc."""
    data_budget = (4 << 20) if vmem_cap <= (64 << 20) else (8 << 20)
    divisors = [b for b in range(1, D + 1) if D % b == 0]
    # Prefer lane-dense (unmasked vst) blocks; fall back to any divisor
    # (masked partial stores are a perf issue only, not correctness).
    aligned = [b for b in divisors if (b * HW) % 128 == 0] or divisors

    def fits(b):
        return 2 * 4 * C * b * HW <= data_budget      # in + out block (f32)

    good = [b for b in aligned if fits(b)]
    bd = max(good) if good else min(aligned)
    if num_tc > 1 and good:
        even = [b for b in good if (N * (D // b)) % num_tc == 0]
        if even:
            bd = max(even)
    return bd


def se_layer(x, raw_params, channel_reduction=4, spatial_reduction=4,
             depth_block=None):
    """x: (N, C, D, H, W) NCDHW like PyTorch.  Eval-mode SELayer forward."""
    N, C, D, H, W = x.shape
    r = spatial_reduction
    Hp, Wp = H // r, W // r
    HW, HpWp = H * W, Hp * Wp
    Cr = C // channel_reduction
    eps = 1e-5

    (w1, b1, g1, be1, rm1, rv1, w2, b2, g2, be2, rm2, rv2) = raw_params

    # Fold eval-mode BatchNorm into the 1x1x1 conv weights / biases.
    s1 = g1 / jnp.sqrt(rv1 + eps)
    s2 = g2 / jnp.sqrt(rv2 + eps)
    w1e = (w1 * s1[:, None]).astype(jnp.float32)                      # (Cr, C)
    b1e = ((b1 - rm1) * s1 + be1).reshape(Cr, 1).astype(jnp.float32)  # (Cr, 1)
    w2e = (w2 * s2[:, None]).astype(jnp.float32)                      # (C, Cr)
    b2e = ((b2 - rm2) * s2 + be2).reshape(C, 1).astype(jnp.float32)   # (C, 1)

    vmem_cap, num_tc = _tpu_budgets()
    Bd = (_pick_depth_block(N, D, C, HW, vmem_cap, num_tc)
          if depth_block is None else depth_block)
    assert D % Bd == 0

    # Plain separable pool / trilinear-upsample (align_corners=True) matrices
    # over flattened (H, W); applied per depth slice inside the kernel — no
    # Bd^2 block-diagonal Kronecker inflation.
    pool_t = jnp.asarray(
        np.kron(_pool_matrix(Hp, H), _pool_matrix(Wp, W)).T)          # (HW, HpWp)
    up_t = jnp.asarray(
        np.kron(_upsample_matrix(H, Hp), _upsample_matrix(W, Wp)).T)  # (HpWp, HW)

    # Free reshape: NCDHW -> (N, C, D*H*W); no HBM transpose.
    x3 = x.reshape(N, C, D * HW)

    # VMEM budget: in+out data blocks (double-buffered) + constants
    # (double-buffered, only a few hundred KiB now) + compiler headroom,
    # capped at ~75% of physical VMEM (generation-aware).
    block_bytes = x.dtype.itemsize * C * Bd * HW
    const_bytes = 4 * (2 * HW * HpWp + 2 * Cr * C + Cr + C)
    need = 4 * block_bytes + 2 * const_bytes + (4 << 20)
    vmem_limit = int(min(max(need, 16 << 20), min(100 << 20, (vmem_cap * 3) // 4)))

    # Advisory cost estimate so XLA can overlap neighbors around this
    # memory-bound custom call.
    flops = N * D * (2 * C * HW * HpWp          # pool
                     + 2 * Cr * C * HpWp        # conv1
                     + 2 * C * Cr * HpWp        # conv2
                     + 2 * C * HpWp * HW        # upsample
                     + 3 * C * HW)              # epilogue
    cost = pl.CostEstimate(
        flops=int(flops),
        transcendentals=int(N * D * HpWp * (Cr + C)),
        bytes_accessed=int(2 * N * C * D * HW * x.dtype.itemsize + const_bytes))

    kernel = functools.partial(se_kernel, bd=Bd, hw=HW)

    out = pl.pallas_call(
        kernel,
        out_shape=jax.ShapeDtypeStruct((N, C, D * HW), x.dtype),
        grid=(N, D // Bd),
        in_specs=[
            pl.BlockSpec((None, C, Bd * HW), lambda n, d: (n, 0, d)),
            pl.BlockSpec((HW, HpWp), lambda n, d: (0, 0)),
            pl.BlockSpec((HpWp, HW), lambda n, d: (0, 0)),
            pl.BlockSpec((Cr, C), lambda n, d: (0, 0)),
            pl.BlockSpec((Cr, 1), lambda n, d: (0, 0)),
            pl.BlockSpec((C, Cr), lambda n, d: (0, 0)),
            pl.BlockSpec((C, 1), lambda n, d: (0, 0)),
        ],
        out_specs=pl.BlockSpec((None, C, Bd * HW), lambda n, d: (n, 0, d)),
        compiler_params=pltpu.CompilerParams(
            dimension_semantics=("parallel", "parallel"),
            vmem_limit_bytes=vmem_limit),
        cost_estimate=cost,
    )(x3, pool_t, up_t, w1e, b1e, w2e, b2e)

    return out.reshape(N, C, D, H, W)


# --------------------------- pure-JAX reference ---------------------------- #
def _bn_eval(x, gamma, beta, rm, rv, eps=1e-5):
    sh = (1, -1, 1, 1, 1)
    return ((x - rm.reshape(sh)) / jnp.sqrt(rv.reshape(sh) + eps)
            * gamma.reshape(sh) + beta.reshape(sh))


def se_layer_ref(x, raw_params, channel_reduction=4, spatial_reduction=4):
    (w1, b1, g1, be1, rm1, rv1, w2, b2, g2, be2, rm2, rv2) = raw_params
    N, C, D, H, W = x.shape
    r = spatial_reduction
    Hp, Wp = H // r, W // r
    # AvgPool3d (1, r, r)
    p = x.reshape(N, C, D, Hp, r, Wp, r).mean(axis=(4, 6))
    # Conv 1x1x1 + BN(eval) + ELU
    h = jnp.einsum('ncdhw,kc->nkdhw', p, w1) + b1.reshape(1, -1, 1, 1, 1)
    h = _bn_eval(h, g1, be1, rm1, rv1)
    h = jnp.where(h > 0, h, jnp.expm1(jnp.minimum(h, 0.0)))
    # Conv 1x1x1 + BN(eval) + Sigmoid
    q = jnp.einsum('nkdhw,ck->ncdhw', h, w2) + b2.reshape(1, -1, 1, 1, 1)
    q = _bn_eval(q, g2, be2, rm2, rv2)
    s = jax.nn.sigmoid(q)
    # Trilinear upsample (depth identity, align_corners=True)
    Uh = jnp.asarray(_upsample_matrix(H, Hp))
    Uw = jnp.asarray(_upsample_matrix(W, Wp))
    y = jnp.einsum('hH,ncdHW,wW->ncdhw', Uh, s, Uw)
    return x + y * x


def make_params(key, C, channel_reduction=4):
    """Deterministic synthetic raw parameters (conv weights/biases + BN stats)."""
    Cr = C // channel_reduction
    ks = jax.random.split(key, 12)
    w1 = 0.1 * jax.random.normal(ks[0], (Cr, C), jnp.float32)   # Conv3d(C->Cr, 1)
    b1 = 0.1 * jax.random.normal(ks[1], (Cr,), jnp.float32)
    g1 = 1.0 + 0.1 * jax.random.normal(ks[2], (Cr,), jnp.float32)
    be1 = 0.1 * jax.random.normal(ks[3], (Cr,), jnp.float32)
    rm1 = 0.1 * jax.random.normal(ks[4], (Cr,), jnp.float32)
    rv1 = 1.0 + 0.1 * jnp.abs(jax.random.normal(ks[5], (Cr,), jnp.float32))
    w2 = 0.1 * jax.random.normal(ks[6], (C, Cr), jnp.float32)   # Conv3d(Cr->C, 1)
    b2 = 0.1 * jax.random.normal(ks[7], (C,), jnp.float32)
    g2 = 1.0 + 0.1 * jax.random.normal(ks[8], (C,), jnp.float32)
    be2 = 0.1 * jax.random.normal(ks[9], (C,), jnp.float32)
    rm2 = 0.1 * jax.random.normal(ks[10], (C,), jnp.float32)
    rv2 = 1.0 + 0.1 * jnp.abs(jax.random.normal(ks[11], (C,), jnp.float32))
    return (w1, b1, g1, be1, rm1, rv1, w2, b2, g2, be2, rm2, rv2)


if __name__ == "__main__":
    N, C, D, H, W = 2, 8, 2, 16, 16
    channel_reduction, spatial_reduction = 4, 4

    key = jax.random.PRNGKey(0)
    kx, kp = jax.random.split(key)
    x = jax.random.normal(kx, (N, C, D, H, W), jnp.float32)
    params = make_params(kp, C, channel_reduction)

    z = se_layer(x, params, channel_reduction, spatial_reduction)
    z = jax.block_until_ready(z)

    z_ref = se_layer_ref(x, params, channel_reduction, spatial_reduction)
    np.testing.assert_allclose(np.asarray(z), np.asarray(z_ref),
                               rtol=1e-4, atol=1e-4)
    assert z.shape == x.shape and z.dtype == x.dtype
    print("KERNEL_OK")
</pallas_src>

<mosaic_0001>
module attributes {stable_mosaic.version = 11 : i64} {
  func.func @se_kernel(%arg0: i32, %arg1: i32, %arg2: memref<1x8x512xf32, #tpu.memory_space<vmem>>, %arg3: memref<256x16xf32, #tpu.memory_space<vmem>>, %arg4: memref<16x256xf32, #tpu.memory_space<vmem>>, %arg5: memref<2x8xf32, #tpu.memory_space<vmem>>, %arg6: memref<2x1xf32, #tpu.memory_space<vmem>>, %arg7: memref<8x2xf32, #tpu.memory_space<vmem>>, %arg8: memref<8x1xf32, #tpu.memory_space<vmem>>, %arg9: memref<1x8x512xf32, #tpu.memory_space<vmem>>) attributes {dimension_semantics = [#tpu.dimension_semantics<parallel>, #tpu.dimension_semantics<parallel>], iteration_bounds = array<i64: 2, 1>, scalar_prefetch = 0 : i64, scratch_operands = 0 : i64, tpu.core_type = #tpu.core_type<tc>, window_params = [{transform_indices = @transform_0, window_bounds = array<i64: 1, 8, 512>}, {pipeline_mode = #tpu.pipeline_mode<synchronous>, transform_indices = @transform_1, window_bounds = array<i64: 256, 16>}, {pipeline_mode = #tpu.pipeline_mode<synchronous>, transform_indices = @transform_2, window_bounds = array<i64: 16, 256>}, {pipeline_mode = #tpu.pipeline_mode<synchronous>, transform_indices = @transform_3, window_bounds = array<i64: 2, 8>}, {pipeline_mode = #tpu.pipeline_mode<synchronous>, transform_indices = @transform_4, window_bounds = array<i64: 2, 1>}, {pipeline_mode = #tpu.pipeline_mode<synchronous>, transform_indices = @transform_5, window_bounds = array<i64: 8, 2>}, {pipeline_mode = #tpu.pipeline_mode<synchronous>, transform_indices = @transform_6, window_bounds = array<i64: 8, 1>}, {transform_indices = @transform_7, window_bounds = array<i64: 1, 8, 512>}]} {
    %c0 = arith.constant 0 : index
    %c0_0 = arith.constant 0 : index
    %0 = vector.load %arg3[%c0, %c0_0] : memref<256x16xf32, #tpu.memory_space<vmem>>, vector<256x16xf32>
    %c0_1 = arith.constant 0 : index
    %c0_2 = arith.constant 0 : index
    %1 = vector.load %arg4[%c0_1, %c0_2] : memref<16x256xf32, #tpu.memory_space<vmem>>, vector<16x256xf32>
    %c0_3 = arith.constant 0 : index
    %c0_4 = arith.constant 0 : index
    %2 = vector.load %arg5[%c0_3, %c0_4] : memref<2x8xf32, #tpu.memory_space<vmem>>, vector<2x8xf32>
    %c0_5 = arith.constant 0 : index
    %c0_6 = arith.constant 0 : index
    %3 = vector.load %arg6[%c0_5, %c0_6] : memref<2x1xf32, #tpu.memory_space<vmem>>, vector<2x1xf32>
    %c0_7 = arith.constant 0 : index
    %c0_8 = arith.constant 0 : index
    %4 = vector.load %arg7[%c0_7, %c0_8] : memref<8x2xf32, #tpu.memory_space<vmem>>, vector<8x2xf32>
    %c0_9 = arith.constant 0 : index
    %c0_10 = arith.constant 0 : index
    %5 = vector.load %arg8[%c0_9, %c0_10] : memref<8x1xf32, #tpu.memory_space<vmem>>, vector<8x1xf32>
    %c0_11 = arith.constant 0 : index
    %c0_12 = arith.constant 0 : index
    %c0_13 = arith.constant 0 : index
    %6 = vector.load %arg2[%c0_11, %c0_12, %c0_13] : memref<1x8x512xf32, #tpu.memory_space<vmem>>, vector<1x8x256xf32>
    %7 = vector.shape_cast %6 : vector<1x8x256xf32> to vector<8x256xf32>
    %cst = arith.constant dense<0.000000e+00> : vector<8x16xf32>
    %8 = tpu.matmul %7, %0, %cst {dimension_numbers = #tpu.dot_dimension_numbers<[1], [0], [0], [1], [0, 0, 1, 1], [], []>} : vector<8x256xf32>, vector<256x16xf32>, vector<8x16xf32> -> vector<8x16xf32>
    %cst_14 = arith.constant dense<0.000000e+00> : vector<2x16xf32>
    %9 = tpu.matmul %2, %8, %cst_14 {dimension_numbers = #tpu.dot_dimension_numbers<[1], [0], [0], [1], [0, 0, 1, 1], [], []>} : vector<2x8xf32>, vector<8x16xf32>, vector<2x16xf32> -> vector<2x16xf32>
    %10 = vector.broadcast %3 : vector<2x1xf32> to vector<2x16xf32>
    %11 = arith.addf %9, %10 : vector<2x16xf32>
    %cst_15 = arith.constant 0.000000e+00 : f32
    %12 = vector.broadcast %cst_15 : f32 to vector<2x16xf32>
    %13 = arith.cmpf ogt, %11, %12 : vector<2x16xf32>
    %cst_16 = arith.constant 0.000000e+00 : f32
    %14 = vector.broadcast %cst_16 : f32 to vector<2x16xf32>
    %15 = arith.minimumf %11, %14 : vector<2x16xf32>
    %16 = math.exp %15 : vector<2x16xf32>
    %cst_17 = arith.constant 1.000000e+00 : f32
    %17 = vector.broadcast %cst_17 : f32 to vector<2x16xf32>
    %18 = arith.subf %16, %17 : vector<2x16xf32>
    %19 = arith.select %13, %11, %18 : vector<2x16xi1>, vector<2x16xf32>
    %cst_18 = arith.constant dense<0.000000e+00> : vector<8x16xf32>
    %20 = tpu.matmul %4, %19, %cst_18 {dimension_numbers = #tpu.dot_dimension_numbers<[1], [0], [0], [1], [0, 0, 1, 1], [], []>} : vector<8x2xf32>, vector<2x16xf32>, vector<8x16xf32> -> vector<8x16xf32>
    %21 = vector.broadcast %5 : vector<8x1xf32> to vector<8x16xf32>
    %22 = arith.addf %20, %21 : vector<8x16xf32>
    %23 = arith.negf %22 : vector<8x16xf32>
    %24 = math.exp %23 : vector<8x16xf32>
    %cst_19 = arith.constant 1.000000e+00 : f32
    %25 = vector.broadcast %cst_19 : f32 to vector<8x16xf32>
    %26 = arith.addf %25, %24 : vector<8x16xf32>
    %27 = arith.divf %25, %26 : vector<8x16xf32>
    %cst_20 = arith.constant dense<0.000000e+00> : vector<8x256xf32>
    %28 = tpu.matmul %27, %1, %cst_20 {dimension_numbers = #tpu.dot_dimension_numbers<[1], [0], [0], [1], [0, 0, 1, 1], [], []>} : vector<8x16xf32>, vector<16x256xf32>, vector<8x256xf32> -> vector<8x256xf32>
    %c0_21 = arith.constant 0 : index
    %c0_22 = arith.constant 0 : index
    %c0_23 = arith.constant 0 : index
    %29 = vector.load %arg2[%c0_21, %c0_22, %c0_23] : memref<1x8x512xf32, #tpu.memory_space<vmem>>, vector<1x8x256xf32>
    %30 = vector.shape_cast %29 : vector<1x8x256xf32> to vector<8x256xf32>
    %cst_24 = arith.constant 1.000000e+00 : f32
    %31 = vector.broadcast %cst_24 : f32 to vector<8x256xf32>
    %32 = arith.addf %31, %28 : vector<8x256xf32>
    %33 = arith.mulf %30, %32 : vector<8x256xf32>
    %c0_25 = arith.constant 0 : index
    %c0_26 = arith.constant 0 : index
    %c0_27 = arith.constant 0 : index
    %34 = vector.load %arg9[%c0_25, %c0_26, %c0_27] : memref<1x8x512xf32, #tpu.memory_space<vmem>>, vector<1x8x256xf32>
    %35 = vector.shape_cast %34 : vector<1x8x256xf32> to vector<8x256xf32>
    %36 = vector.shape_cast %33 : vector<8x256xf32> to vector<1x8x256xf32>
    tpu.vector_store %arg9[%c0_25, %c0_26, %c0_27], %36 {strides = array<i32>} : memref<1x8x512xf32, #tpu.memory_space<vmem>>, vector<1x8x256xf32>,
    %c0_28 = arith.constant 0 : index
    %c0_29 = arith.constant 0 : index
    %c256 = arith.constant 256 : index
    %37 = vector.load %arg2[%c0_28, %c0_29, %c256] : memref<1x8x512xf32, #tpu.memory_space<vmem>>, vector<1x8x256xf32>
    %38 = vector.shape_cast %37 : vector<1x8x256xf32> to vector<8x256xf32>
    %cst_30 = arith.constant dense<0.000000e+00> : vector<8x16xf32>
    %39 = tpu.matmul %38, %0, %cst_30 {dimension_numbers = #tpu.dot_dimension_numbers<[1], [0], [0], [1], [0, 0, 1, 1], [], []>} : vector<8x256xf32>, vector<256x16xf32>, vector<8x16xf32> -> vector<8x16xf32>
    %cst_31 = arith.constant dense<0.000000e+00> : vector<2x16xf32>
    %40 = tpu.matmul %2, %39, %cst_31 {dimension_numbers = #tpu.dot_dimension_numbers<[1], [0], [0], [1], [0, 0, 1, 1], [], []>} : vector<2x8xf32>, vector<8x16xf32>, vector<2x16xf32> -> vector<2x16xf32>
    %41 = vector.broadcast %3 : vector<2x1xf32> to vector<2x16xf32>
    %42 = arith.addf %40, %41 : vector<2x16xf32>
    %cst_32 = arith.constant 0.000000e+00 : f32
    %43 = vector.broadcast %cst_32 : f32 to vector<2x16xf32>
    %44 = arith.cmpf ogt, %42, %43 : vector<2x16xf32>
    %cst_33 = arith.constant 0.000000e+00 : f32
    %45 = vector.broadcast %cst_33 : f32 to vector<2x16xf32>
    %46 = arith.minimumf %42, %45 : vector<2x16xf32>
    %47 = math.exp %46 : vector<2x16xf32>
    %cst_34 = arith.constant 1.000000e+00 : f32
    %48 = vector.broadcast %cst_34 : f32 to vector<2x16xf32>
    %49 = arith.subf %47, %48 : vector<2x16xf32>
    %50 = arith.select %44, %42, %49 : vector<2x16xi1>, vector<2x16xf32>
    %cst_35 = arith.constant dense<0.000000e+00> : vector<8x16xf32>
    %51 = tpu.matmul %4, %50, %cst_35 {dimension_numbers = #tpu.dot_dimension_numbers<[1], [0], [0], [1], [0, 0, 1, 1], [], []>} : vector<8x2xf32>, vector<2x16xf32>, vector<8x16xf32> -> vector<8x16xf32>
    %52 = vector.broadcast %5 : vector<8x1xf32> to vector<8x16xf32>
    %53 = arith.addf %51, %52 : vector<8x16xf32>
    %54 = arith.negf %53 : vector<8x16xf32>
    %55 = math.exp %54 : vector<8x16xf32>
    %cst_36 = arith.constant 1.000000e+00 : f32
    %56 = vector.broadcast %cst_36 : f32 to vector<8x16xf32>
    %57 = arith.addf %56, %55 : vector<8x16xf32>
    %58 = arith.divf %56, %57 : vector<8x16xf32>
    %cst_37 = arith.constant dense<0.000000e+00> : vector<8x256xf32>
    %59 = tpu.matmul %58, %1, %cst_37 {dimension_numbers = #tpu.dot_dimension_numbers<[1], [0], [0], [1], [0, 0, 1, 1], [], []>} : vector<8x16xf32>, vector<16x256xf32>, vector<8x256xf32> -> vector<8x256xf32>
    %c0_38 = arith.constant 0 : index
    %c0_39 = arith.constant 0 : index
    %c256_40 = arith.constant 256 : index
    %60 = vector.load %arg2[%c0_38, %c0_39, %c256_40] : memref<1x8x512xf32, #tpu.memory_space<vmem>>, vector<1x8x256xf32>
    %61 = vector.shape_cast %60 : vector<1x8x256xf32> to vector<8x256xf32>
    %cst_41 = arith.constant 1.000000e+00 : f32
    %62 = vector.broadcast %cst_41 : f32 to vector<8x256xf32>
    %63 = arith.addf %62, %59 : vector<8x256xf32>
    %64 = arith.mulf %61, %63 : vector<8x256xf32>
    %c0_42 = arith.constant 0 : index
    %c0_43 = arith.constant 0 : index
    %c256_44 = arith.constant 256 : index
    %65 = vector.load %arg9[%c0_42, %c0_43, %c256_44] : memref<1x8x512xf32, #tpu.memory_space<vmem>>, vector<1x8x256xf32>
    %66 = vector.shape_cast %65 : vector<1x8x256xf32> to vector<8x256xf32>
    %67 = vector.shape_cast %64 : vector<8x256xf32> to vector<1x8x256xf32>
    tpu.vector_store %arg9[%c0_42, %c0_43, %c256_44], %67 {strides = array<i32>} : memref<1x8x512xf32, #tpu.memory_space<vmem>>, vector<1x8x256xf32>,
    return
  }
  func.func @transform_0(%arg0: i32, %arg1: i32) -> (i32, i32, i32) {
    %c0_i32 = arith.constant 0 : i32
    %c0_i32_0 = arith.constant 0 : i32
    return %arg0, %c0_i32, %arg1 : i32, i32, i32
  }
  func.func @transform_1(%arg0: i32, %arg1: i32) -> (i32, i32) {
    %c0_i32 = arith.constant 0 : i32
    %c0_i32_0 = arith.constant 0 : i32
    %c0_i32_1 = arith.constant 0 : i32
    return %c0_i32, %c0_i32_0 : i32, i32
  }
  func.func @transform_2(%arg0: i32, %arg1: i32) -> (i32, i32) {
    %c0_i32 = arith.constant 0 : i32
    %c0_i32_0 = arith.constant 0 : i32
    %c0_i32_1 = arith.constant 0 : i32
    return %c0_i32, %c0_i32_0 : i32, i32
  }
  func.func @transform_3(%arg0: i32, %arg1: i32) -> (i32, i32) {
    %c0_i32 = arith.constant 0 : i32
    %c0_i32_0 = arith.constant 0 : i32
    %c0_i32_1 = arith.constant 0 : i32
    return %c0_i32, %c0_i32_0 : i32, i32
  }
  func.func @transform_4(%arg0: i32, %arg1: i32) -> (i32, i32) {
    %c0_i32 = arith.constant 0 : i32
    %c0_i32_0 = arith.constant 0 : i32
    %c0_i32_1 = arith.constant 0 : i32
    return %c0_i32, %c0_i32_0 : i32, i32
  }
  func.func @transform_5(%arg0: i32, %arg1: i32) -> (i32, i32) {
    %c0_i32 = arith.constant 0 : i32
    %c0_i32_0 = arith.constant 0 : i32
    %c0_i32_1 = arith.constant 0 : i32
    return %c0_i32, %c0_i32_0 : i32, i32
  }
  func.func @transform_6(%arg0: i32, %arg1: i32) -> (i32, i32) {
    %c0_i32 = arith.constant 0 : i32
    %c0_i32_0 = arith.constant 0 : i32
    %c0_i32_1 = arith.constant 0 : i32
    return %c0_i32, %c0_i32_0 : i32, i32
  }
  func.func @transform_7(%arg0: i32, %arg1: i32) -> (i32, i32, i32) {
    %c0_i32 = arith.constant 0 : i32
    %c0_i32_0 = arith.constant 0 : i32
    return %arg0, %c0_i32, %arg1 : i32, i32, i32
  }
}

</mosaic_0001>

<bundles_post_ra>
// kernel: tpu_custom_call.1
= control target key start
LH: loop header
LB: loop body
LE: loop exit
PB: predicated region body
PF: predicated region fallthrough
CT: control target
= control target key end

     0   :  { %12 = vsyncpa [#allocation3], 0  ;;  %s1834_s0 = inlined_call_operand.vmem [shape: f32[2,8,512], index: 0, kind: input, shape index: {}]   ;;  %s1835_s1 = inlined_call_operand.vmem [shape: f32[256,16], index: 1, kind: input, shape index: {}]   ;;  %s1836_s2 = inlined_call_operand.vmem [shape: f32[16,256], index: 2, kind: input, shape index: {}]   ;;  %s1837_s3 = inlined_call_operand.vmem [shape: f32[2,8], index: 3, kind: input, shape index: {}]   ;;  %s1838_s4 = inlined_call_operand.vmem [shape: f32[2,1], index: 4, kind: input, shape index: {}]   ;;  %s1839_s5 = inlined_call_operand.vmem [shape: f32[8,2], index: 5, kind: input, shape index: {}]   ;;  %s1840_s6 = inlined_call_operand.vmem [shape: f32[8,1], index: 6, kind: input, shape index: {}]   ;;  %s1841_s7 = inlined_call_operand.hbm [shape: f32[2,8,512], index: 7, kind: output, shape index: {}]  }
   0x1   :  { %14 = vsyncpa [#allocation3 + $0x1], 0  ;;  %s1463_s24 = smov 0   ;;  %s1465_s25 = smov 0  }
   0x2   :  { %s1467_s26 = smov 0   ;;  %s1469_s27 = smov 0  }
   0x3   :  { %s1471_s28 = smov 0   ;;  %s1473_s29 = smov 0  }
   0x4 LB: > { %s1071_s30 = sadd.s32 4294967295, %s1417_s29   ;;  %s1072_s8 = sadd.s32 4294967294, %s1417_s29   ;;  %s1417_s29 = sphi %s1473_s29, %s20_s29   ;;  %s1413_s28 = sphi %s1471_s28, %s1848_s28   ;;  %s1409_s27 = sphi %s1469_s27, %s1847_s27   ;;  %s1405_s26 = sphi %s1467_s26, %s1846_s26   ;;  %s1401_s25 = sphi %s1465_s25, %s1845_s25   ;;  %s1397_s24 = sphi %s1463_s24, %s1844_s24  }
   0x5   : > { %s32_s9 = sadd.s32 1, %s1413_s28  ;;  %s195_s10 = sadd.s32 1, %s1405_s26 }
   0x6   : > { %p34_p0 = scmp.ge.s32.totalorder %s32_s9, 2  ;;  %p205_p1 = scmp.ne.s32.totalorder %s1405_s26, %s1401_s25 }
   0x7   : > { %p206_p2 = scmp.eq.s32.totalorder %s1071_s30, 1  ;;  %p211_p3 = scmp.ne.s32.totalorder %s1401_s25, %s1397_s24 }
   0x8   : > { %s1850_s9 = smov (%p34_p0, %s32_s9), 0  ;;  %p212_p5 = scmp.eq.s32.totalorder %s1072_s8, 1 }
   0x9   : > { %p1503_p4 = por %p206_p2, %p205_p1  ;;  %s190_s12 = ssub.s32 %s1413_s28, %s1850_s9 }
   0xa   : > { %p1075_p6 = scmp.ge.s32.totalorder %s1417_s29, 1  ;;  %p193_p7 = scmp.eq.s32.totalorder %s190_s12, 0 }
   0xb   : > { %p1510_p8 = por %p212_p5, %p211_p3  ;;  %p261_p9 = scmp.lt.s32.totalorder %s1417_s29, 3 }
   0xc   : > { %s1516_s14 = scalar_select %p193_p7, %s1405_s26, %s195_s10  }
   0xd   : > { %p262_p10 = pnand %p1075_p6, %p261_p9 }
   0xe   : > { %v324_v0 = vld [vmem:[%s1835_s1 + $0x80] sm:$0xff] (!%p262_p10)  ;;  %v325_v1 = vld [vmem:[%s1835_s1 + $0x88] sm:$0xff] (!%p262_p10)  ;;  %p298_p11 = scmp.lt.s32.totalorder (!%p262_p10), %s1409_s27, 1  ;;  %v326_v5 = vld [vmem:[%s1835_s1 + $0x90] sm:$0xff] (!%p262_p10)  ;;  %v1419_v50 = vmov (!%p262_p10), 0.0   ;;  %vm1420_vm0 = vmmov (!%p262_p10), 0  }
   0xf   : > { %265 = sbr.rel (%p262_p10) target bundleno = 1690 (0x69a), region = 48  ;;  %v308_v2 = vld [vmem:[%s1835_s1] sm:$0xff] (!%p262_p10)  ;;  %v1528_v3 = vpack.c.bf16 (!%p262_p10), %v325_v1, %v324_v0  ;;  %v309_v4 = vld [vmem:[%s1835_s1 + $0x8] sm:$0xff] (!%p262_p10)  ;;  %v327_v6 = vld [vmem:[%s1835_s1 + $0x98] sm:$0xff] (!%p262_p10)  ;;  %1176 = vmatprep.subr.mxu1 (!%p262_p10), %v1419_v50  ;;  %1178 = vmatprep.mubr.msk.f32.mxu1 (!%p262_p10), %vm1420_vm0, %v1419_v50  ;;  %v1421_v52 = vmov (!%p262_p10), 0   ;;  %vm425_vm1 = vcmask (!%p262_p10), 64512  }
  0x10   : > { %v1539_v7 = vpack.c.bf16 (!%p262_p10), %v309_v4, %v308_v2  ;;  %v1541_v8 = vpack.c.bf16 (!%p262_p10), %v327_v6, %v326_v5  ;;  %v310_v9 = vld [vmem:[%s1835_s1 + $0x10] sm:$0xff] (!%p262_p10)  ;;  %v311_v10 = vld [vmem:[%s1835_s1 + $0x18] sm:$0xff] (!%p262_p10)  ;;  %v328_v11 = vld [vmem:[%s1835_s1 + $0xa0] sm:$0xff] (!%p262_p10)  ;;  %1326 = vset.pattern.permute.xlu0 (!%p262_p10), %v1421_v52  ;;  %vm514_vm2 = vcmask (!%p262_p10), 1041408   ;;  %vm510_vm4 = vcmask (!%p262_p10), 15360   ;;  %s294_s12 = sand.u32 (!%p262_p10), 1, %s1401_s25  }
  0x11   : > { %1197 = vmatprep.subr.bf16.mxu0 (!%p262_p10), %v1528_v3  ;;  %v329_v12 = vld [vmem:[%s1835_s1 + $0xa8] sm:$0xff] (!%p262_p10)  ;;  %v1558_v13 = vpack.c.bf16 (!%p262_p10), %v311_v10, %v310_v9  ;;  %v312_v15 = vld [vmem:[%s1835_s1 + $0x20] sm:$0xff] (!%p262_p10)  ;;  %v330_v17 = vld [vmem:[%s1835_s1 + $0xb0] sm:$0xff] (!%p262_p10)  ;;  %vm594_vm5 = vcmask (!%p262_p10), 130048   ;;  %s1422_s22 = smov (!%p262_p10), [#allocation2]  }
  0x12   : > { %1199 = vmatpush3.bf16.msra.mxu0 (!%p262_p10), %v1539_v7  ;;  %v1561_v14 = vpack.c.bf16 (!%p262_p10), %v329_v12, %v328_v11  ;;  %v313_v16 = vld [vmem:[%s1835_s1 + $0x28] sm:$0xff] (!%p262_p10)  ;;  %v331_v18 = vld [vmem:[%s1835_s1 + $0xb8] sm:$0xff] (!%p262_p10)  ;;  %v314_v21 = vld [vmem:[%s1835_s1 + $0x30] sm:$0xff] (!%p262_p10)  ;;  %s1343_s30 = sshll.u32 (!%p262_p10), %s1422_s22, 4  ;;  %s1344_s30 = int_to_ptr.vmem [resolvable:$false] %s1343_s30 }
  0x13   : > { %1201 = vmatprep.subr.bf16.mxu0 (!%p262_p10), %v1541_v8  ;;  %v1581_v19 = vpack.c.bf16 (!%p262_p10), %v313_v16, %v312_v15  ;;  %v1584_v20 = vpack.c.bf16 (!%p262_p10), %v331_v18, %v330_v17  ;;  %v315_v22 = vld [vmem:[%s1835_s1 + $0x38] sm:$0xff] (!%p262_p10)  ;;  %v332_v23 = vld [vmem:[%s1835_s1 + $0xc0] sm:$0xff] (!%p262_p10)  ;;  %v333_v24 = vld [vmem:[%s1835_s1 + $0xc8] sm:$0xff] (!%p262_p10)  ;;  %s1345_s8 = scalar_lea.vmem (!%p262_p10), %s1344_s30, 1024 }
  0x14   : > { %v1603_v26 = vpack.c.bf16 (!%p262_p10), %v315_v22, %v314_v21  ;;  %v1606_v27 = vpack.c.bf16 (!%p262_p10), %v333_v24, %v332_v23  ;;  %v316_v28 = vld [vmem:[%s1835_s1 + $0x40] sm:$0xff] (!%p262_p10)  ;;  %v317_v29 = vld [vmem:[%s1835_s1 + $0x48] sm:$0xff] (!%p262_p10)  ;;  %v334_v30 = vld [vmem:[%s1835_s1 + $0xd0] sm:$0xff] (!%p262_p10) }
  0x15   : > { %v335_v31 = vld [vmem:[%s1835_s1 + $0xd8] sm:$0xff] (!%p262_p10)  ;;  %v1621_v32 = vpack.c.bf16 (!%p262_p10), %v317_v29, %v316_v28  ;;  %v318_v34 = vld [vmem:[%s1835_s1 + $0x50] sm:$0xff] (!%p262_p10)  ;;  %v336_v36 = vld [vmem:[%s1835_s1 + $0xe0] sm:$0xff] (!%p262_p10) }
  0x16   : > { %s299_s20 = scalar_select %p298_p11, %s1409_s27, 1  ;;  %1203 = vmatpush3.bf16.msra.mxu0 %v1558_v13  ;;  %v1624_v33 = vpack.c.bf16 %v335_v31, %v334_v30  ;;  %v319_v35 = vld [vmem:[%s1835_s1 + $0x58] sm:$0xff]  ;;  %v337_v37 = vld [vmem:[%s1835_s1 + $0xe8] sm:$0xff]  ;;  %v320_v40 = vld [vmem:[%s1835_s1 + $0x60] sm:$0xff] }
  0x17   : > { %1205 = vmatprep.subr.bf16.mxu0 %v1561_v14  ;;  %v1639_v38 = vpack.c.bf16 %v319_v35, %v318_v34  ;;  %v1642_v39 = vpack.c.bf16 %v337_v37, %v336_v36  ;;  %v321_v41 = vld [vmem:[%s1835_s1 + $0x68] sm:$0xff]  ;;  %v338_v42 = vld [vmem:[%s1835_s1 + $0xf0] sm:$0xff]  ;;  %v339_v43 = vld [vmem:[%s1835_s1 + $0xf8] sm:$0xff] }
  0x18   : > { %s1096_s23 = sshll.u32 %s299_s20, 5  ;;  %v1657_v44 = vpack.c.bf16 %v321_v41, %v320_v40  ;;  %v1660_v45 = vpack.c.bf16 %v339_v43, %v338_v42  ;;  %v322_v46 = vld [vmem:[%s1835_s1 + $0x70] sm:$0xff]  ;;  %v323_v47 = vld [vmem:[%s1835_s1 + $0x78] sm:$0xff]  ;;  %v345_v51 = vld [vmem:[%s1838_s4] sm:$0x3]  ;;  %s979_s20 = scalar_lea.sflag [#allocation3], %s294_s12 }
  0x19   : > { %s1578_s21 = scalar_lea.vmem %s1834_s0, %s1096_s23  ;;  %v1669_v48 = vpack.c.bf16 %v323_v47, %v322_v46  ;;  %422 = vperm.xlu0 %1326, %v345_v51   ;;  %v347_v53 = vld [vmem:[%s1840_s6] sm:$0xff]  ;;  %v341_v5 = vld [vmem:[%s1836_s2 + $0x8] sm:$0xff]  ;;  %v343_v6 = vld [vmem:[%s1836_s2 + $0x18] sm:$0xff]  ;;  %s1076_s23 = sshll.u32 %s294_s12, 5 }
  0x1a   : > { %v1599_v25 = vld [vmem:[%s1578_s21 + $0x8] sm:$0xff]  ;;  %1207 = vmatpush3.bf16.msra.mxu0 %v1581_v19  ;;  %v1674_v49 = vld [vmem:[%s1578_s21] sm:$0xff]  ;;  %v1720_v10 = vpack.c.bf16 %v343_v6, %v341_v5  ;;  %v342_v11 = vld [vmem:[%s1836_s2 + $0x10] sm:$0xff]  ;;  %s1759_s15 = scalar_lea.vmem [#allocation2], %s1076_s23 }
  0x1b   : > { %414 = vmatprep.mubr.f32.mxu0 %v1599_v25  ;;  %1209 = vmatprep.subr.bf16.mxu0 %v1584_v20  ;;  %v1692_v57 = vld [vmem:[%s1837_s3] sm:$0x3]  ;;  %v1734_v24 = vld [vmem:[%s1578_s21 + $0x18] sm:$0xff]  ;;  %s995_s16 = sshll.u32 %s1759_s15, 4  ;;  %s1785_s16 = int_to_ptr.vmem [resolvable:$true] %s995_s16 }
  0x1c   : > { %v1705_v2 = vld [vmem:[%s1839_s5] sm:$0xff]  ;;  %p1346_p1 = scmp.lt.s32.totalorder %s1785_s16, %s1344_s30 }
  0x1d   : > { %507 = vperm.xlu0 %1326, %v347_v53   ;;  %v340_v9 = vld [vmem:[%s1836_s2] sm:$0xff] }
  0x1e   : > { %1211 = vmatpush3.bf16.msra.mxu0 %v1603_v26  ;;  %v1725_v12 = vpack.c.bf16 %v342_v11, %v340_v9 }
  0x1f   : > { %1213 = vmatprep.subr.bf16.mxu0 %v1606_v27 }
  0x22   : > { %1215 = vmatpush3.bf16.msra.mxu0 %v1621_v32 }
  0x23   : > { %1217 = vmatprep.subr.bf16.mxu0 %v1624_v33 }
  0x26   : > { %1219 = vmatpush3.bf16.msra.mxu0 %v1639_v38 }
  0x27   : > { %1221 = vmatprep.subr.bf16.mxu0 %v1642_v39 }
  0x2a   : > { %1223 = vmatpush3.bf16.msra.mxu0 %v1657_v44 }
  0x2b   : > { %1225 = vmatprep.subr.bf16.mxu0 %v1660_v45 }
  0x2e   : > { %1227 = vmatpush3.bf16.msra.mxu0 %v1669_v48 }
  0x2f   : > { %1186 = vmatprep.subr.mxu0 %v1419_v50 }
  0x31   : > { %415 = vmatmul.mubr.f32.vlgmr.msra.gmra.mrb[0].mxu0 %v1674_v49 }
  0x32   : > { %1188 = vmatprep.mubr.msk.f32.mxu0 %vm1420_vm0, %v1419_v50 }
  0x98   : > { %v1699_v58 = vpop.permute.xlu0 %422 }
  0x9c   : > { %v1730_v15 = vpop.permute.xlu0 %507 }
 0x104   : > { %v1130_v54 = vpop.f32.mrb[0].mxu0 }
 0x105   : > { %v1131_v55 = vpop.f32.mrb[1].mxu0 }
 0x106   : > { %v1132_v56 = vadd.f32 %v1131_v55, %v1130_v54 }
 0x108   : > { %1177 = vmatpush3.msra.mxu1 %v1132_v56 }
 0x109   : > { %1179 = vmatmul.mubr.msk.f32.vlgmr.msra.gmra.mrb[0].mxu1 %vm425_vm1, %v1692_v57  ;;  %1181 = vmatprep.subr.mxu1 %v1419_v50 }
 0x10a   : > { %1183 = vmatprep.mubr.msk.f32.mxu1 %vm1420_vm0, %v1419_v50 }
 0x1dc   : > { %v495_v59 = vpop.f32.mrb[0].mxu1 }
 0x1dd   : > { %v496_v60 = vadd.f32 %v495_v59, %v1699_v58  ;;  %v1180_v61 = vpop.f32.mrb[1].mxu1 }
 0x1df   : > { %v500_v62 = vmin.f32 %v496_v60, 0.0  ;;  %vm499_vm3 = vcmp.gt.f32.partialorder %v496_v60, 0.0 }
 0x1e1   : > { %v501_v63 = vmul.f32 1.442695, %v500_v62 }
 0x1e3   : > { %1327 = vpow2.f32 %v501_v63 }
 0x1ed   : > { %v1328_v0 = vpop.eup %1327 }
 0x1ee   : > { %v1080_v1 = vadd.f32 -1.0, %v1328_v0 }
 0x1f0   : > { %v504_v4 = vsel %vm499_vm3, %v496_v60, %v1080_v1 }
 0x1f1   : > { %1182 = vmatpush3.msk.msra.mxu1 %vm514_vm2, %v504_v4 }
 0x1f2   : > { %1184 = vmatmul.mubr.msk.f32.vlgmr.msra.gmra.mrb[2].mxu1 %vm510_vm4, %v1705_v2  ;;  %1229 = vmatprep.subr.bf16.mxu1 %v1720_v10 }
 0x1f3   : > { %662 = vmatprep.mubr.f32.mxu1 %v1419_v50  ;;  %1231 = vmatpush1.bf16.msra.mxu1 %v1725_v12 }
 0x1f4   : > { %1233 = vmatprep.subr.bf16.mxu1 %v1528_v3  ;;  %v673_v3 = vld [vmem:[%s1578_s21 + $0x10] sm:$0xff]  ;;  %s1097_s21 = sshll.u32 %s1409_s27, 9  ;;  %s1339_s27 = scalar_lea.vmem %s1785_s16, 512 }
 0x1f5   : > { %s1783_s19 = scalar_lea.hbm %s1841_s7, %s1097_s21  ;;  %p1340_p12 = scmp.ne.s32.totalorder %s1785_s16, %s1339_s27 }
 0x1f6   : > { %p1347_p2 = scmp.lt.s32.totalorder %s1345_s8, %s1339_s27 }
 0x1f7   : > { %p1341_p13 = pnand %p1340_p12, %p1503_p4 }
 0x1f8   : > { %p1348_p3 = por %p1347_p2, %p1346_p1 }
 0x1f9   : > { %p1342_p0 = pneg %p1341_p13 }
 0x1fb   : > { %p1349_p5 = pnand %p1348_p3, %p1342_p0 }
 0x2c5   : > { %v584_v16 = vpop.f32.mrb[2].mxu1 }
 0x2c6   : > { %v585_v17 = vadd.f32 %v584_v16, %v1730_v15  ;;  %v1185_v18 = vpop.f32.mrb[3].mxu1 }
 0x2c8   : > { %v1083_v21 = vmul.f32 -1.442695, %v585_v17 }
 0x2ca   : > { %1329 = vpow2.f32 %v1083_v21 }
 0x2d4   : > { %v1330_v22 = vpop.eup %1329 }
 0x2d5   : > { %v591_v23 = vadd.f32 1.0, %v1330_v22 }
 0x2d7   : > { %1331 = vrcp.f32 %v591_v23 }
 0x2e1   : > { %v1332_v28 = vpop.eup %1331 }
 0x2e2   : > { %1084 = vmatmul.mubr.msk.f32.vlgmr.msra.gmra.mrb[4].mxu1 %vm594_vm5, %v1332_v28 }
 0x2e3   : > { %1235 = vmatpush3.bf16.msra.mxu1 %v1539_v7  ;;  %739 = vmatprep.mubr.f32.mxu1 %v1734_v24 }
 0x2e4   : > { %1237 = vmatprep.subr.bf16.mxu1 %v1541_v8 }
 0x2e7   : > { %1239 = vmatpush3.bf16.msra.mxu1 %v1558_v13 }
 0x2e8   : > { %1241 = vmatprep.subr.bf16.mxu1 %v1561_v14 }
 0x2eb   : > { %1243 = vmatpush3.bf16.msra.mxu1 %v1581_v19 }
 0x2ec   : > { %1245 = vmatprep.subr.bf16.mxu1 %v1584_v20 }
 0x2ef   : > { %1247 = vmatpush3.bf16.msra.mxu1 %v1603_v26 }
 0x2f0   : > { %1249 = vmatprep.subr.bf16.mxu1 %v1606_v27 }
 0x2f3   : > { %1251 = vmatpush3.bf16.msra.mxu1 %v1621_v32 }
 0x2f4   : > { %1253 = vmatprep.subr.bf16.mxu1 %v1624_v33 }
 0x2f7   : > { %1255 = vmatpush3.bf16.msra.mxu1 %v1639_v38 }
 0x2f8   : > { %1257 = vmatprep.subr.bf16.mxu1 %v1642_v39 }
 0x2fb   : > { %1259 = vmatpush3.bf16.msra.mxu1 %v1657_v44 }
 0x2fc   : > { %1261 = vmatprep.subr.bf16.mxu1 %v1660_v45 }
 0x2ff   : > { %1263 = vmatpush3.bf16.msra.mxu1 %v1669_v48 }
 0x302   : > { %740 = vmatmul.mubr.f32.vlgmr.msra.gmra.mrb[6].mxu1 %v673_v3 }
 0x3b5   : > { %v664_v7 = vpop.f32.mrb[4].mxu1 }
 0x3b6   : > { %v665_v8 = vadd.f32 1.0, %v664_v7  ;;  %v666_v13 = vpop.f32.mrb[5].mxu1 }
 0x3b7   : > { %v667_v14 = vadd.f32 1.0, %v666_v13 }
 0x3b8   : > { %v669_v19 = vmul.f32 %v665_v8, %v1674_v49 }
 0x3b9   : > { %v670_v20 = vmul.f32 %v667_v14, %v1599_v25 }
 0x3ba   : > { %671 = vst [vmem:[%s1759_s15] sm:$0xff] %v669_v19 }
 0x3bb   : > { %672 = vst [vmem:[%s1759_s15 + $0x8] sm:$0xff] %v670_v20 }
 0x3d5   : > { %v1169_v26 = vpop.f32.mrb[6].mxu1 }
 0x3d6   : > { %v1170_v27 = vpop.f32.mrb[7].mxu1 }
 0x3d7   : > { %v1171_v29 = vadd.f32 %v1170_v27, %v1169_v26 }
 0x3d9   : > { %1187 = vmatpush3.msra.mxu0 %v1171_v29 }
 0x3da   : > { %1189 = vmatmul.mubr.msk.f32.vlgmr.msra.gmra.mrb[2].mxu0 %vm425_vm1, %v1692_v57  ;;  %1191 = vmatprep.subr.mxu0 %v1419_v50 }
 0x3db   : > { %1193 = vmatprep.mubr.msk.f32.mxu0 %vm1420_vm0, %v1419_v50 }
 0x4ad   : > { %v811_v30 = vpop.f32.mrb[2].mxu0 }
 0x4ae   : > { %v812_v25 = vadd.f32 %v811_v30, %v1699_v58  ;;  %v1190_v31 = vpop.f32.mrb[3].mxu0 }
 0x4b0   : > { %v816_v32 = vmin.f32 %v812_v25, 0.0  ;;  %vm815_vm6 = vcmp.gt.f32.partialorder %v812_v25, 0.0 }
 0x4b2   : > { %v817_v33 = vmul.f32 1.442695, %v816_v32 }
 0x4b4   : > { %1333 = vpow2.f32 %v817_v33 }
 0x4be   : > { %v1334_v34 = vpop.eup %1333 }
 0x4bf   : > { %v1086_v35 = vadd.f32 -1.0, %v1334_v34 }
 0x4c1   : > { %v820_v36 = vsel %vm815_vm6, %v812_v25, %v1086_v35 }
 0x4c2   : > { %1192 = vmatpush3.msk.msra.mxu0 %vm514_vm2, %v820_v36 }
 0x4c3   : > { %1194 = vmatmul.mubr.msk.f32.vlgmr.msra.gmra.mrb[4].mxu0 %vm510_vm4, %v1705_v2  ;;  %1265 = vmatprep.subr.bf16.mxu0 %v1720_v10 }
 0x4c4   : > { %1267 = vmatpush1.bf16.msra.mxu0 %v1725_v12  ;;  %967 = vmatprep.mubr.f32.mxu0 %v1419_v50 }
 0x596   : > { %v890_v37 = vpop.f32.mrb[4].mxu0 }
 0x597   : > { %v891_v38 = vadd.f32 %v890_v37, %v1730_v15  ;;  %v1195_v39 = vpop.f32.mrb[5].mxu0 }
 0x599   : > { %v1089_v40 = vmul.f32 -1.442695, %v891_v38 }
 0x59b   : > { %1335 = vpow2.f32 %v1089_v40 }
 0x5a5   : > { %v1336_v41 = vpop.eup %1335 }
 0x5a6   : > { %v897_v42 = vadd.f32 1.0, %v1336_v41 }
 0x5a8   : > { %1337 = vrcp.f32 %v897_v42 }
 0x5b2   : > { %v1338_v43 = vpop.eup %1337 }
 0x5b3   : > { %1090 = vmatmul.mubr.msk.f32.vlgmr.msra.gmra.mrb[6].mxu0 %vm594_vm5, %v1338_v43 }
 0x686   : > { %v969_v44 = vpop.f32.mrb[6].mxu0 }
 0x687   : > { %v970_v45 = vadd.f32 1.0, %v969_v44  ;;  %v971_v46 = vpop.f32.mrb[7].mxu0 }
 0x688   : > { %v972_v47 = vadd.f32 1.0, %v971_v46 }
 0x689   : > { %v974_v48 = vmul.f32 %v970_v45, %v673_v3 }
 0x68a   : > { %v975_v49 = vmul.f32 %v972_v47, %v1734_v24 }
 0x68b   : > { %976 = vst [vmem:[%s1759_s15 + $0x10] sm:$0xff] %v974_v48 }
 0x68c   : > { %977 = vst [vmem:[%s1759_s15 + $0x18] sm:$0xff] %v975_v49 }
 0x68d   : > { %1352 = shalt.err (!%p1349_p5)
}
 0x68e   : > { %s1353_s10 = scalar_lea.hbm %s1783_s19, 512  ;;  %s1357_s15 = scalar_lea.hbm %s1841_s7, 1024 }
 0x68f   : > { %p1354_p6 = scmp.ne.s32.totalorder %s1783_s19, %s1353_s10  ;;  %p1358_p10 = scmp.lt.u32.totalorder %s1783_s19, %s1841_s7 }
 0x690   : > { %p1359_p11 = scmp.lt.u32.totalorder %s1357_s15, %s1353_s10  ;;  %p1361_p13 = scmp.lt.u32.totalorder %s1353_s10, %s1783_s19 }
 0x691   : > { %p1355_p7 = pnand %p1354_p6, %p1503_p4 }
 0x692   : > { %p1360_p12 = por %p1359_p11, %p1358_p10 }
 0x693   : > { %p1356_p9 = pneg %p1355_p7 }
 0x694   : > { %p1362_p0 = por %p1361_p13, %p1360_p12 }
 0x696   : > { %p1363_p1 = pnand %p1362_p0, %p1356_p9 }
 0x698   : > { %1366 = shalt.err (!%p1363_p1)
}
 0x699   : > { %1268 = dma.vmem_to_hbm [thread:$0]  (%p1503_p4), %s1785_s16, 512, %s1783_s19, %s979_s20  }
 0x69a PF: > { %p1274_p2 = scmp.ge.s32.totalorder %s1417_s29, 2  ;;  %s1007_s18 = sand.u32 1, %s1397_s24  }
 0x69b   : > { %s1008_s27 = scalar_lea.sflag [#allocation3], %s1007_s18 }
 0x69c   : > { %p1271_p3 = pnand %p1274_p2, %p1510_p8 }
 0x69e   : > { %1392 = dma.done.wait (!%p1271_p3), %s1008_s27, 512  }
 0x69f   : > { %1394 = vsyncadd (!%p1271_p3), %s1008_s27, 4294966784  ;;  %s20_s29 = sadd.s32 1, %s1417_s29   ;;  %s1844_s24 = smov %s1401_s25 }
 0x6a0   : > { %p17_p5 = scmp.ge.s32.totalorder %s20_s29, 4   ;;  %s1845_s25 = smov %s1405_s26 }
 0x6a1   : > { %s1846_s26 = smov %s1516_s14  ;;  %s1847_s27 = smov %s1413_s28 }
 0x6a2   : > { %s1848_s28 = smov %s1850_s9  ;;  %19 = sbr.rel (!%p17_p5) target bundleno = 4 (0x4), region = 83 }
 0x6a9   :  { %1013 = vsyncpa [#allocation3], 1 }
 0x6aa   :  { %1015 = vsyncpa [#allocation3 + $0x1], 1 }

</bundles_post_ra>
